<compile_context>
chip_gen: v7x
topology: tpu7x:2x2x1
jax: 0.10.0
libtpu: 0.0.40
codegen_flags: <defaults>
</compile_context>

<pallas_src>
import jax
import jax.numpy as jnp
from jax.experimental import pallas as pl
from jax.experimental.pallas import tpu as pltpu


def linear_add_weight_kernel(x_ref, w_ref, o_ref):
    # x_ref : SMEM (B, in_f)        -- activations read as scalars
    # w_ref : VMEM (in_f + 1, out_f) -- rows [weight.T ; bias] packed in wrapper
    # o_ref : VMEM (B, out_f)
    B, in_f = x_ref.shape
    w = w_ref[...].astype(jnp.float32)        # (in_f + 1, out_f), one vreg-ish
    bias_row = w[in_f:in_f + 1, :]            # (1, out_f)

    for b in range(B):                        # static unroll, B == 2
        # `v1 + weight.T` term: bias + weight.T[b]  (vector add)
        acc = bias_row + w[b:b + 1, :]
        # Unrolled K=2 scalar-splat multiply-add (pure VPU, no MXU/XLU traffic).
        for k in range(in_f):
            acc = acc + x_ref[b, k].astype(jnp.float32) * w[k:k + 1, :]
        o_ref[b:b + 1, :] = acc.astype(o_ref.dtype)


def prepare_params(weight, bias):
    """One-time, x-independent parameter prep (hoisted out of the per-call path).

    weight: (out_f, in_f); bias: (out_f,).
    Returns w_aug: (in_f + 1, out_f) with rows [weight.T ; bias].
    """
    return jnp.concatenate([weight.T, bias.reshape(1, -1)], axis=0)


def model_forward(x, w_aug):
    """x: (B, in_f); w_aug: (in_f + 1, out_f) from prepare_params. Requires B == in_f."""
    B, in_f = x.shape
    out_f = w_aug.shape[1]
    assert in_f == 2, "kernel is specialized for nn.Linear(2, 8) (K unrolled to 2)"
    assert w_aug.shape[0] == in_f + 1
    assert B == in_f, (
        "`v1 + weight` is only (transpose-)broadcastable when batch == in_features"
    )

    return pl.pallas_call(
        linear_add_weight_kernel,
        out_shape=jax.ShapeDtypeStruct((B, out_f), x.dtype),
        in_specs=[
            pl.BlockSpec(memory_space=pltpu.MemorySpace.SMEM),   # x as SMEM scalars
            pl.BlockSpec(memory_space=pltpu.MemorySpace.VMEM),   # packed [weight.T ; bias]
        ],
        out_specs=pl.BlockSpec(memory_space=pltpu.MemorySpace.VMEM),
    )(x, w_aug)


if __name__ == "__main__":
    key = jax.random.PRNGKey(0)
    kx, kw, kb = jax.random.split(key, 3)

    in_features, out_features, batch = 2, 8, 2

    # deterministic parameter init (kaiming-uniform-like bound, as nn.Linear)
    bound = 1.0 / (in_features ** 0.5)
    weight = jax.random.uniform(kw, (out_features, in_features),
                                dtype=jnp.float32, minval=-bound, maxval=bound)
    bias = jax.random.uniform(kb, (out_features,),
                              dtype=jnp.float32, minval=-bound, maxval=bound)

    x = jax.random.normal(kx, (batch, in_features), dtype=jnp.float32)

    # Parameter packing happens once, outside the per-call path.
    w_aug = jax.block_until_ready(prepare_params(weight, bias))

    out = model_forward(x, w_aug)
    out = jax.block_until_ready(out)

    # pure-JAX reference check (same semantics: v1 + weight.T)
    ref = x @ weight.T + bias + weight.T
    assert out.shape == (batch, out_features)
    assert jnp.allclose(out, ref, atol=1e-5, rtol=1e-5)

    print("KERNEL_OK")
</pallas_src>

<mosaic_0001>
module attributes {stable_mosaic.version = 11 : i64} {
  func.func @linear_add_weight_kernel(%arg0: memref<2x2xf32, #tpu.memory_space<smem>>, %arg1: memref<3x8xf32, #tpu.memory_space<vmem>>, %arg2: memref<2x8xf32, #tpu.memory_space<vmem>>) attributes {dimension_semantics = [], scalar_prefetch = 0 : i64, scratch_operands = 0 : i64, tpu.core_type = #tpu.core_type<tc>} {
    %c0 = arith.constant 0 : index
    %c0_0 = arith.constant 0 : index
    %0 = vector.load %arg1[%c0, %c0_0] : memref<3x8xf32, #tpu.memory_space<vmem>>, vector<3x8xf32>
    %1 = vector.extract_strided_slice %0 {offsets = [2, 0], sizes = [1, 8], strides = [1, 1]} : vector<3x8xf32> to vector<1x8xf32>
    %2 = vector.extract_strided_slice %0 {offsets = [0, 0], sizes = [1, 8], strides = [1, 1]} : vector<3x8xf32> to vector<1x8xf32>
    %3 = arith.addf %1, %2 : vector<1x8xf32>
    %c0_1 = arith.constant 0 : index
    %c0_2 = arith.constant 0 : index
    %4 = memref.load %arg0[%c0_1, %c0_2] : memref<2x2xf32, #tpu.memory_space<smem>>
    %5 = vector.extract_strided_slice %0 {offsets = [0, 0], sizes = [1, 8], strides = [1, 1]} : vector<3x8xf32> to vector<1x8xf32>
    %6 = vector.broadcast %4 : f32 to vector<1x8xf32>
    %7 = arith.mulf %6, %5 : vector<1x8xf32>
    %8 = arith.addf %3, %7 : vector<1x8xf32>
    %c0_3 = arith.constant 0 : index
    %c1 = arith.constant 1 : index
    %9 = memref.load %arg0[%c0_3, %c1] : memref<2x2xf32, #tpu.memory_space<smem>>
    %10 = vector.extract_strided_slice %0 {offsets = [1, 0], sizes = [1, 8], strides = [1, 1]} : vector<3x8xf32> to vector<1x8xf32>
    %11 = vector.broadcast %9 : f32 to vector<1x8xf32>
    %12 = arith.mulf %11, %10 : vector<1x8xf32>
    %13 = arith.addf %8, %12 : vector<1x8xf32>
    %c0_4 = arith.constant 0 : index
    %c0_5 = arith.constant 0 : index
    %14 = vector.load %arg2[%c0_4, %c0_5] : memref<2x8xf32, #tpu.memory_space<vmem>>, vector<1x8xf32>
    tpu.vector_store %arg2[%c0_4, %c0_5], %13 {strides = array<i32>} : memref<2x8xf32, #tpu.memory_space<vmem>>, vector<1x8xf32>,
    %15 = vector.extract_strided_slice %0 {offsets = [1, 0], sizes = [1, 8], strides = [1, 1]} : vector<3x8xf32> to vector<1x8xf32>
    %16 = arith.addf %1, %15 : vector<1x8xf32>
    %c1_6 = arith.constant 1 : index
    %c0_7 = arith.constant 0 : index
    %17 = memref.load %arg0[%c1_6, %c0_7] : memref<2x2xf32, #tpu.memory_space<smem>>
    %18 = vector.extract_strided_slice %0 {offsets = [0, 0], sizes = [1, 8], strides = [1, 1]} : vector<3x8xf32> to vector<1x8xf32>
    %19 = vector.broadcast %17 : f32 to vector<1x8xf32>
    %20 = arith.mulf %19, %18 : vector<1x8xf32>
    %21 = arith.addf %16, %20 : vector<1x8xf32>
    %c1_8 = arith.constant 1 : index
    %c1_9 = arith.constant 1 : index
    %22 = memref.load %arg0[%c1_8, %c1_9] : memref<2x2xf32, #tpu.memory_space<smem>>
    %23 = vector.extract_strided_slice %0 {offsets = [1, 0], sizes = [1, 8], strides = [1, 1]} : vector<3x8xf32> to vector<1x8xf32>
    %24 = vector.broadcast %22 : f32 to vector<1x8xf32>
    %25 = arith.mulf %24, %23 : vector<1x8xf32>
    %26 = arith.addf %21, %25 : vector<1x8xf32>
    %c1_10 = arith.constant 1 : index
    %c0_11 = arith.constant 0 : index
    %27 = vector.load %arg2[%c1_10, %c0_11] : memref<2x8xf32, #tpu.memory_space<vmem>>, vector<1x8xf32>
    tpu.vector_store %arg2[%c1_10, %c0_11], %26 {strides = array<i32>} : memref<2x8xf32, #tpu.memory_space<vmem>>, vector<1x8xf32>,
    return
  }
}

</mosaic_0001>

<bundles_post_ra>
// kernel: tpu_custom_call.1
= control target key start
LH: loop header
LB: loop body
LE: loop exit
PB: predicated region body
PF: predicated region fallthrough
CT: control target
= control target key end

     0   :  { %7 = vsyncpa [#allocation5], 0  ;;  %s210_s0 = inlined_call_operand.hbm [shape: f32[2,2], index: 0, kind: input, shape index: {}]   ;;  %s211_s1 = inlined_call_operand.hbm [shape: f32[3,8], index: 1, kind: input, shape index: {}]   ;;  %s212_s2 = inlined_call_operand.hbm [shape: f32[2,8], index: 2, kind: output, shape index: {}]  }
   0x1   :  { %8 = vsyncpa [#allocation3], 0 }
   0x2   :  { %9 = vsyncpa [#allocation4], 0  ;;  %s96_s11 = scalar_lea.hbm %s210_s0, 32 }
   0x3   :  { %p97_p0 = scmp.ne.s32.totalorder %s210_s0, %s96_s11  ;;  %p100_p1 = scmp.lt.u32.totalorder %s96_s11, %s210_s0 }
   0x5   :  { %p102_p2 = pnand %p100_p1, %p97_p0 }
   0x7   :  { %105 = shalt.err (!%p102_p2)
}
   0x8   :  { %s156_s16 = smov [#allocation2]   ;;  %s157_s19 = smov [#allocation6]  }
   0x9   :  { %17 = dma.hbm_to_smem %s210_s0, 32, %s156_s16, [#allocation5]  }
   0xa   :  { %s24_s20 = sshll.u32 %s157_s19, 4  ;;  %s106_s23 = scalar_lea.hbm %s211_s1, 64  ;;  %s25_s20 = int_to_ptr.vmem [resolvable:$true] %s24_s20 }
   0xb   :  { %p107_p3 = scmp.ne.s32.totalorder %s211_s1, %s106_s23  ;;  %p110_p4 = scmp.lt.u32.totalorder %s106_s23, %s211_s1 }
   0xd   :  { %p112_p5 = pnand %p110_p4, %p107_p3 }
   0xf   :  { %115 = shalt.err (!%p112_p5)
}
  0x10   :  { %s116_s28 = scalar_lea.vmem %s25_s20, 64  ;;  %p121_p7 = scmp.lt.s32.totalorder %s25_s20, %s25_s20 }
  0x11   :  { %p117_p6 = scmp.ne.s32.totalorder %s25_s20, %s116_s28  ;;  %p122_p8 = scmp.lt.s32.totalorder %s116_s28, %s116_s28 }
  0x13   :  { %p123_p9 = por %p122_p8, %p121_p7 }
  0x15   :  { %p124_p10 = pnand %p123_p9, %p117_p6 }
  0x17   :  { %127 = shalt.err (!%p124_p10)
}
  0x18   :  { %27 = dma.hbm_to_vmem [thread:$0]  %s211_s1, 64, %s25_s20, [#allocation3]  }
  0x19   :  { %150 = dma.done.wait [#allocation5], 32  }
  0x1a   :  { %151 = vsyncadd [#allocation5], 4294967264 }
  0x1b   :  { %152 = dma.done.wait [#allocation3], 64  }
  0x1c   :  { %153 = vsyncadd [#allocation3], 4294967232 }
  0x1d   :  { %34 = sfence }
  0x1e   :  { %v35_v0 = vld [vmem:[#allocation6] sm:$0x7]  ;;  %s40_s30 = sld [smem:[#allocation2]]  ;;  %s90_s3 = sld [smem:[#allocation2 + $0x1]]  ;;  %vm54_vm0 = vcmask 59394  }
  0x1f   :  { %s91_s4 = sld [smem:[#allocation2 + $0x80]]  ;;  %s92_s5 = sld [smem:[#allocation2 + $0x81]]  ;;  %v37_v1 = vrot.slane %v35_v0, 6  ;;  %v56_v2 = vrot.slane %v35_v0, 7 }
  0x20   :  { %s158_s1 = smov [#allocation7]  }
  0x21   :  { %v39_v5 = vadd.f32 %v37_v1, %v35_v0  ;;  %v58_v9 = vadd.f32 %v56_v2, %v35_v0  ;;  %s80_s6 = sshll.u32 %s158_s1, 4  ;;  %s81_s6 = int_to_ptr.vmem [resolvable:$true] %s80_s6 }
  0x22   :  { %s128_s7 = scalar_lea.vmem %s81_s6, 32  ;;  %p133_p12 = scmp.lt.s32.totalorder %s81_s6, %s81_s6 }
  0x23   :  { %p129_p11 = scmp.ne.s32.totalorder %s81_s6, %s128_s7  ;;  %p134_p13 = scmp.lt.s32.totalorder %s128_s7, %s128_s7 }
  0x24   :  { %v41_v3 = vstv %s40_s30  ;;  %v48_v4 = vstv %s90_s3 }
  0x25   :  { %v42_v6 = vmul.f32 %v41_v3, %v35_v0  ;;  %v49_v7 = vmul.f32 %v48_v4, %v35_v0  ;;  %v60_v8 = vstv %s91_s4  ;;  %v67_v11 = vstv %s92_s5  ;;  %p135_p0 = por %p134_p13, %p133_p12 }
  0x26   :  { %v61_v10 = vmul.f32 %v60_v8, %v35_v0  ;;  %v68_v14 = vmul.f32 %v67_v11, %v35_v0 }
  0x27   :  { %v44_v12 = vrot.slane %v42_v6, 6  ;;  %v51_v13 = vrot.slane %v49_v7, 7  ;;  %p136_p1 = pnand %p135_p0, %p129_p11 }
  0x28   :  { %v63_v15 = vrot.slane %v61_v10, 6  ;;  %v70_v17 = vrot.slane %v68_v14, 7 }
  0x29   :  { %v46_v16 = vadd.f32 %v44_v12, %v39_v5 }
  0x2a   :  { %v65_v18 = vadd.f32 %v63_v15, %v58_v9 }
  0x2b   :  { %v53_v19 = vadd.f32 %v51_v13, %v46_v16 }
  0x2c   :  { %v72_v20 = vadd.f32 %v70_v17, %v65_v18 }
  0x2d   :  { %55 = vst.msk [vmem:[#allocation7 - $0x2] sm:$0x4] %vm54_vm0, %v53_v19 }
  0x2e   :  { %73 = vst.msk [vmem:[#allocation7 - $0x1] sm:$0x4] %vm54_vm0, %v72_v20 }
  0x2f   :  { %139 = shalt.err (!%p136_p1)
}
  0x30   :  { %s140_s10 = scalar_lea.hbm %s212_s2, 32 }
  0x31   :  { %p141_p2 = scmp.ne.s32.totalorder %s212_s2, %s140_s10  ;;  %p144_p3 = scmp.lt.u32.totalorder %s140_s10, %s212_s2 }
  0x33   :  { %p146_p4 = pnand %p144_p3, %p141_p2 }
  0x35   :  { %149 = shalt.err (!%p146_p4)
}
  0x36   :  { %83 = dma.vmem_to_hbm [thread:$0]  %s81_s6, 32, %s212_s2, [#allocation4]  }
  0x37   :  { %154 = dma.done.wait [#allocation4], 32  }
  0x38   :  { %155 = vsyncadd [#allocation4], 4294967264 }
  0x39   :  { %87 = vsyncpa [#allocation3], 1 }
  0x3a   :  { %88 = vsyncpa [#allocation4], 1 }
  0x3b   :  { %89 = vsyncpa [#allocation5], 1 }

</bundles_post_ra>
